<compile_context>
chip_gen: v6e
topology: v6e:2x2x1
jax: 0.10.0
libtpu: 0.0.40
codegen_flags: <defaults>
</compile_context>

<pallas_src>
import jax
import jax.numpy as jnp
from jax.experimental import pallas as pl
from jax.experimental.pallas import tpu as pltpu


def _smreg_kernel(x_ref, w_ref, b_ref, out_ref):
    # MXU matmul in bf16 (or whatever dtype the caller streamed), f32 accumulate.
    logits = jnp.dot(x_ref[...], w_ref[...], preferred_element_type=jnp.float32)
    logits = logits + b_ref[...].astype(jnp.float32)               # (TB, C), f32

    # Numerically stable softmax over the class axis; exact division so each
    # row sums to 1 to fp32 precision (no approx reciprocal).
    m = jnp.max(logits, axis=-1, keepdims=True)
    e = jnp.exp(logits - m)
    out_ref[...] = (e / jnp.sum(e, axis=-1, keepdims=True)).astype(out_ref.dtype)


def _choose_tile_rows(B, F, x_itemsize, *, x_budget_bytes=16 << 20, align=256,
                      max_tile_rows=8192):
    """Pick the batch-tile height TB.

    - small batches: one block covering the whole batch (block == array dim, so
      the (8,128) divisibility rule is satisfied trivially).
    - large batches: TB sized so the double-buffered x tiles fit a VMEM byte
      budget, rounded down to a multiple of 256 (full MXU pass height on
      v6e/v7x, and a multiple of 8 sublanes), capped at ~B/2 so the grid has at
      least 2 steps (both v7x TensorCores get work), and capped at 8192 rows.
    """
    if B <= 2 * align:
        return B
    tb_budget = x_budget_bytes // (2 * F * x_itemsize)          # double-buffered x
    tb_budget = max(align, (tb_budget // align) * align)
    tb_half = max(align, ((B // 2) // align) * align)           # >= 2 grid steps
    return int(min(tb_budget, tb_half, max_tile_rows))


def sm_regression_forward(x, w_t, b):
    """x: (B, F), w_t: (F, C), b: (1, C) -> (B, C) softmax probabilities (f32).

    x and w_t are cast to bf16 before streaming (halves the dominant HBM
    traffic); all accumulation and softmax math stays in f32.
    """
    B, F = x.shape
    Fw, C = w_t.shape
    assert Fw == F and b.shape == (1, C)

    x_lo = x.astype(jnp.bfloat16)
    w_lo = w_t.astype(jnp.bfloat16)
    b_f32 = b.astype(jnp.float32)

    TB = _choose_tile_rows(B, F, x_lo.dtype.itemsize)
    grid = (pl.cdiv(B, TB),)

    cost = pl.CostEstimate(
        flops=2 * B * F * C,
        transcendentals=B * C,
        bytes_accessed=(B * F * x_lo.dtype.itemsize
                        + F * C * w_lo.dtype.itemsize
                        + C * b_f32.dtype.itemsize
                        + B * C * 4),
    )

    return pl.pallas_call(
        _smreg_kernel,
        out_shape=jax.ShapeDtypeStruct((B, C), jnp.float32),
        grid=grid,
        in_specs=[
            pl.BlockSpec((TB, F), lambda i: (i, 0)),   # streamed batch tiles (bf16)
            pl.BlockSpec((F, C), lambda i: (0, 0)),    # weights: VMEM-resident
            pl.BlockSpec((1, C), lambda i: (0, 0)),    # bias:    VMEM-resident
        ],
        out_specs=pl.BlockSpec((TB, C), lambda i: (i, 0)),
        compiler_params=pltpu.CompilerParams(
            dimension_semantics=("parallel",),          # batch tiles are independent
            # Above v5e's 16 MiB default scoped limit, below v7x's 64 MiB VMEM;
            # leaves headroom for the double-buffered (TB,F) x tiles plus the
            # lane-padded (TB,128) output tiles.
            vmem_limit_bytes=48 << 20,
        ),
        cost_estimate=cost,
    )(x_lo, w_lo, b_f32)

    # TODO(synk): for very wide F (thousands of features) add a K-tiled path
    # (grid axis over F chunks marked "arbitrary" with an f32 scratch
    # accumulator); the single-block-F design here covers the module's use case.


def _reference(x, w_t, b):
    # Mirror the kernel's numerics: bf16 inputs, f32 accumulation, exact softmax.
    xf = x.astype(jnp.bfloat16).astype(jnp.float32)
    wf = w_t.astype(jnp.bfloat16).astype(jnp.float32)
    logits = xf @ wf + b.astype(jnp.float32)
    logits = logits - jnp.max(logits, axis=-1, keepdims=True)
    e = jnp.exp(logits)
    return e / jnp.sum(e, axis=-1, keepdims=True)


if __name__ == "__main__":
    num_features = 32
    batch = 8
    num_classes = 3

    key = jax.random.PRNGKey(0)
    kx, kw, kb = jax.random.split(key, 3)

    # Deterministic init mimicking torch.nn.Linear's uniform(-1/sqrt(F), 1/sqrt(F)).
    bound = 1.0 / jnp.sqrt(jnp.float32(num_features))
    w_torch_layout = jax.random.uniform(
        kw, (num_classes, num_features), jnp.float32, -bound, bound
    )
    b_vec = jax.random.uniform(kb, (num_classes,), jnp.float32, -bound, bound)
    x = jax.random.normal(kx, (batch, num_features), jnp.float32)

    w_t = jnp.transpose(w_torch_layout)         # (F, 3)
    b = b_vec.reshape(1, num_classes)           # (1, 3)

    probas = jax.block_until_ready(sm_regression_forward(x, w_t, b))
    ref = _reference(x, w_t, b)

    assert probas.shape == (batch, num_classes)
    assert jnp.allclose(probas, ref, atol=1e-4, rtol=1e-4), "mismatch vs reference"
    assert jnp.allclose(jnp.sum(probas, axis=-1), 1.0, atol=1e-5), "rows must sum to 1"

    print("KERNEL_OK")
</pallas_src>

<mosaic_0001>
module attributes {stable_mosaic.version = 11 : i64} {
  func.func @_smreg_kernel(%arg0: i32, %arg1: memref<8x32xbf16, #tpu.memory_space<vmem>>, %arg2: memref<32x3xbf16, #tpu.memory_space<vmem>>, %arg3: memref<1x3xf32, #tpu.memory_space<vmem>>, %arg4: memref<8x3xf32, #tpu.memory_space<vmem>>) attributes {dimension_semantics = [#tpu.dimension_semantics<parallel>], iteration_bounds = array<i64: 1>, scalar_prefetch = 0 : i64, scratch_operands = 0 : i64, tpu.core_type = #tpu.core_type<tc>, window_params = [{transform_indices = @transform_0, window_bounds = array<i64: 8, 32>}, {pipeline_mode = #tpu.pipeline_mode<synchronous>, transform_indices = @transform_1, window_bounds = array<i64: 32, 3>}, {pipeline_mode = #tpu.pipeline_mode<synchronous>, transform_indices = @transform_2, window_bounds = array<i64: 1, 3>}, {transform_indices = @transform_3, window_bounds = array<i64: 8, 3>}]} {
    %c0 = arith.constant 0 : index
    %c0_0 = arith.constant 0 : index
    %0 = vector.load %arg1[%c0, %c0_0] : memref<8x32xbf16, #tpu.memory_space<vmem>>, vector<8x32xbf16>
    %c0_1 = arith.constant 0 : index
    %c0_2 = arith.constant 0 : index
    %1 = vector.load %arg2[%c0_1, %c0_2] : memref<32x3xbf16, #tpu.memory_space<vmem>>, vector<32x3xbf16>
    %cst = arith.constant dense<0.000000e+00> : vector<8x3xf32>
    %2 = tpu.matmul %0, %1, %cst {dimension_numbers = #tpu.dot_dimension_numbers<[1], [0], [0], [1], [0, 0, 1, 1], [], []>} : vector<8x32xbf16>, vector<32x3xbf16>, vector<8x3xf32> -> vector<8x3xf32>
    %c0_3 = arith.constant 0 : index
    %c0_4 = arith.constant 0 : index
    %3 = vector.load %arg3[%c0_3, %c0_4] : memref<1x3xf32, #tpu.memory_space<vmem>>, vector<1x3xf32>
    %4 = vector.broadcast %3 : vector<1x3xf32> to vector<8x3xf32>
    %5 = arith.addf %2, %4 : vector<8x3xf32>
    %cst_5 = arith.constant dense<0xFF800000> : vector<8xf32>
    %6 = vector.multi_reduction <maximumf>, %5, %cst_5 [1] : vector<8x3xf32> to vector<8xf32>
    %7 = vector.shape_cast %6 : vector<8xf32> to vector<8x1xf32>
    %8 = vector.broadcast %7 : vector<8x1xf32> to vector<8x3xf32>
    %9 = arith.subf %5, %8 : vector<8x3xf32>
    %10 = math.exp %9 : vector<8x3xf32>
    %cst_6 = arith.constant dense<0.000000e+00> : vector<8xf32>
    %11 = vector.multi_reduction <add>, %10, %cst_6 [1] : vector<8x3xf32> to vector<8xf32>
    %12 = vector.shape_cast %11 : vector<8xf32> to vector<8x1xf32>
    %13 = vector.broadcast %12 : vector<8x1xf32> to vector<8x3xf32>
    %14 = arith.divf %10, %13 : vector<8x3xf32>
    %c0_7 = arith.constant 0 : index
    %c0_8 = arith.constant 0 : index
    %15 = vector.load %arg4[%c0_7, %c0_8] : memref<8x3xf32, #tpu.memory_space<vmem>>, vector<8x3xf32>
    tpu.vector_store %arg4[%c0_7, %c0_8], %14 {strides = array<i32>} : memref<8x3xf32, #tpu.memory_space<vmem>>, vector<8x3xf32>,
    return
  }
  func.func @transform_0(%arg0: i32) -> (i32, i32) {
    %c0_i32 = arith.constant 0 : i32
    %c0_i32_0 = arith.constant 0 : i32
    return %arg0, %c0_i32 : i32, i32
  }
  func.func @transform_1(%arg0: i32) -> (i32, i32) {
    %c0_i32 = arith.constant 0 : i32
    %c0_i32_0 = arith.constant 0 : i32
    %c0_i32_1 = arith.constant 0 : i32
    return %c0_i32, %c0_i32_0 : i32, i32
  }
  func.func @transform_2(%arg0: i32) -> (i32, i32) {
    %c0_i32 = arith.constant 0 : i32
    %c0_i32_0 = arith.constant 0 : i32
    %c0_i32_1 = arith.constant 0 : i32
    return %c0_i32, %c0_i32_0 : i32, i32
  }
  func.func @transform_3(%arg0: i32) -> (i32, i32) {
    %c0_i32 = arith.constant 0 : i32
    %c0_i32_0 = arith.constant 0 : i32
    return %arg0, %c0_i32 : i32, i32
  }
}

</mosaic_0001>

<bundles_post_ra>
// kernel: tpu_custom_call.1
= control target key start
LH: loop header
LB: loop body
LE: loop exit
PB: predicated region body
PF: predicated region fallthrough
CT: control target
= control target key end

     0   :  { %v123_v0 = vmov 0.0   ;;  %vm124_vm0 = vmmov 0   ;;  %vm39_vm1 = vcmask 261120   ;;  %vm83_vm2 = vcmask 23552   ;;  %s163_s1 = inlined_call_operand.vmem [shape: bf16[32,3], index: 1, kind: input, shape index: {}]   ;;  %s164_s0 = inlined_call_operand.vmem [shape: bf16[8,32], index: 0, kind: input, shape index: {}]   ;;  %s165_s2 = inlined_call_operand.vmem [shape: f32[1,3], index: 2, kind: input, shape index: {}]   ;;  %s166_s3 = inlined_call_operand.vmem [shape: f32[8,3], index: 3, kind: output, shape index: {}]  }
   0x1   :  { %107 = vmatprep.subr.bf16.mxu0 %v123_v0  ;;  %v117_v1 = vld [vmem:[%s163_s1 + $0x8] sm:$0xff]   ;;  %111 = vmatprep.mubr.msk.bf16.mxu0 %vm124_vm0, %v123_v0  ;;  %v118_v2 = vld [vmem:[%s163_s1] sm:$0xff]  }
   0x2   :  { %108 = vmatpush3.bf16.msra.mxu0 %v117_v1  ;;  %v15_v3 = vld [vmem:[%s164_s0] sm:$0xf] }
   0x3   :  { %109 = vmatprep.subr.bf16.mxu0 %v123_v0  ;;  %v100_v4 = vld [vmem:[%s165_s2] ss:$0 sm:$0xff] }
   0x6   :  { %110 = vmatpush3.bf16.msra.mxu0 %v118_v2 }
   0x9   :  { %112 = vmatmul.mubr.msk.bf16.vlgmr.msra.gmra.mxu0 %vm39_vm1, %v15_v3 }
  0xc9   :  { %v77_v5 = vpop.f32.mrf.mxu0 }
  0xca   :  { %v78_v6 = vadd.f32 %v100_v4, %v77_v5 }
  0xcb   :  { %v113_v7 = vpop.f32.mrf.mxu0 }
  0xcc   :  { %v84_v8 = vsel %vm83_vm2, %v78_v6, -inf }
  0xcd   :  { %85 = vmax.xlane.f32.xlu0 %v84_v8  ;;  %v80_v9 = vpop.f32.mrf.mxu0 }
  0xcf   :  { %v114_v10 = vpop.f32.mrf.mxu0 }
 0x156   :  { %v86_v11 = vpop.xlane.xlu0 %85 }
 0x157   :  { %v87_v12 = vsub.f32 %v78_v6, %v86_v11 }
 0x159   :  { %v88_v13 = vmul.f32 1.442695, %v87_v12 }
 0x15b   :  { %119 = vpow2.f32 %v88_v13 }
 0x168   :  { %v120_v14 = vpop.eup %119 }
 0x169   :  { %v90_v15 = vsel %vm83_vm2, %v120_v14, 0.0 }
 0x16a   :  { %91 = vadd.xlane.f32.xlu0 %v90_v15 }
 0x1f3   :  { %v92_v16 = vpop.xlane.xlu0 %91 }
 0x1f4   :  { %121 = vrcp.f32 %v92_v16 }
 0x201   :  { %v122_v17 = vpop.eup %121 }
 0x202   :  { %v94_v18 = vmul.f32 %v122_v17, %v120_v14 }
 0x204   :  { %95 = vst.msk [vmem:[%s166_s3] sm:$0xff] %vm83_vm2, %v94_v18 }

</bundles_post_ra>
